<compile_context>
chip_gen: v5e
topology: v5e:2x2
jax: 0.10.0
libtpu: 0.0.40
codegen_flags: <defaults>
</compile_context>

<pallas_src>
import functools

import jax
import jax.numpy as jnp
from jax.experimental import pallas as pl
from jax.experimental.pallas import tpu as pltpu


def _round_up(x: int, m: int) -> int:
    return ((x + m - 1) // m) * m


def mynet_kernel(x_ref, w1_ref, b1_ref, w2_ref, b2_ref, w3_ref, b3_ref, o_ref):
    # x tile and weights arrive as bf16; all accumulation / elementwise math is f32.
    x = x_ref[...]                                                   # (TILE_N, in_f) bf16

    # Layer 1: linear + ReLU  (MXU bf16-in / f32-acc)
    h1 = jnp.dot(x, w1_ref[...], preferred_element_type=jnp.float32) + b1_ref[...]
    o1 = jnp.maximum(h1, 0.0)

    # Layer 2: linear + sigmoid (exp goes to the EUP; stays f32)
    h2 = jnp.dot(o1.astype(jnp.bfloat16), w2_ref[...],
                 preferred_element_type=jnp.float32) + b2_ref[...]
    o2 = jax.nn.sigmoid(h2)

    # Layer 3: linear (output columns are zero-padded to a lane-dense width)
    o3 = jnp.dot(o2.astype(jnp.bfloat16), w3_ref[...],
                 preferred_element_type=jnp.float32) + b3_ref[...]
    o_ref[...] = o3.astype(o_ref.dtype)


@functools.partial(jax.jit, static_argnames=("tile_n",))
def mynet_forward(ipt, w1, b1, w2, b2, w3, b3, *, tile_n: int = 512):
    n, in_f = ipt.shape
    h1_f = w1.shape[1]        # 12
    h2_f = w2.shape[1]        # 8
    out_f = w3.shape[1]

    # ---- lane-dense output: pad out_features up to a multiple of 128 ----------
    out_pad = _round_up(max(out_f, 1), 128)
    w3p = jnp.pad(w3, ((0, 0), (0, out_pad - out_f)))
    b3p = jnp.pad(b3, (0, out_pad - out_f))

    # ---- batch tiling: pad N up to a multiple of the tile size ----------------
    tn = min(tile_n, _round_up(n, 8))
    tn = _round_up(tn, 8)
    n_pad = _round_up(n, tn)
    grid = (n_pad // tn,)

    # bf16 MXU operands (f32 accumulate inside the kernel); biases stay f32.
    x = ipt.astype(jnp.bfloat16)
    if n_pad != n:
        x = jnp.pad(x, ((0, n_pad - n), (0, 0)))
    w1b = w1.astype(jnp.bfloat16)
    w2b = w2.astype(jnp.bfloat16)
    w3b = w3p.astype(jnp.bfloat16)
    b1_2d = b1.reshape(1, -1).astype(jnp.float32)
    b2_2d = b2.reshape(1, -1).astype(jnp.float32)
    b3_2d = b3p.reshape(1, -1).astype(jnp.float32)

    # Resident (constant index_map) specs for weights/biases; tiled x/out specs.
    resident = lambda shape: pl.BlockSpec(shape, lambda i: (0,) * len(shape))

    flops = 2 * n_pad * (in_f * h1_f + h1_f * h2_f + h2_f * out_pad)
    bytes_accessed = (
        n_pad * in_f * 2                      # bf16 x stream in
        + n_pad * out_pad * 4                 # f32 out stream back
        + (in_f * h1_f + h1_f * h2_f + h2_f * out_pad) * 2   # bf16 weights
        + (h1_f + h2_f + out_pad) * 4         # f32 biases
    )
    cost = pl.CostEstimate(flops=flops,
                           transcendentals=n_pad * h2_f,   # sigmoid exp
                           bytes_accessed=bytes_accessed)

    out = pl.pallas_call(
        mynet_kernel,
        out_shape=jax.ShapeDtypeStruct((n_pad, out_pad), jnp.float32),
        grid=grid,
        in_specs=[
            pl.BlockSpec((tn, in_f), lambda i: (i, 0)),
            resident(w1b.shape), resident(b1_2d.shape),
            resident(w2b.shape), resident(b2_2d.shape),
            resident(w3b.shape), resident(b3_2d.shape),
        ],
        out_specs=pl.BlockSpec((tn, out_pad), lambda i: (i, 0)),
        compiler_params=pltpu.CompilerParams(
            dimension_semantics=("parallel",)),
        cost_estimate=cost,
    )(x, w1b, b1_2d, w2b, b2_2d, w3b, b3_2d)

    return out[:n, :out_f]


def init_params(key, in_features, out_features):
    # Mirrors nn.init.normal_ (mean=0, std=1) on every parameter, deterministically.
    ks = jax.random.split(key, 6)
    w1 = jax.random.normal(ks[0], (in_features, 12), dtype=jnp.float32)
    b1 = jax.random.normal(ks[1], (12,), dtype=jnp.float32)
    w2 = jax.random.normal(ks[2], (12, 8), dtype=jnp.float32)
    b2 = jax.random.normal(ks[3], (8,), dtype=jnp.float32)
    w3 = jax.random.normal(ks[4], (8, out_features), dtype=jnp.float32)
    b3 = jax.random.normal(ks[5], (out_features,), dtype=jnp.float32)
    return w1, b1, w2, b2, w3, b3


if __name__ == "__main__":
    # Small shapes; N deliberately not a multiple of the tile so padding + the
    # multi-step grid path are exercised (tile_n=16 -> grid of 3 steps).
    N, IN_FEATURES, OUT_FEATURES = 40, 32, 16

    key = jax.random.PRNGKey(0)
    k_in, k_params = jax.random.split(key)

    ipt = jax.random.normal(k_in, (N, IN_FEATURES), dtype=jnp.float32)
    w1, b1, w2, b2, w3, b3 = init_params(k_params, IN_FEATURES, OUT_FEATURES)

    out = mynet_forward(ipt, w1, b1, w2, b2, w3, b3, tile_n=16)
    out = jax.block_until_ready(out)
    assert out.shape == (N, OUT_FEATURES)

    # Reference with the same bf16 MXU operands / f32 accumulation as the kernel.
    xb = ipt.astype(jnp.bfloat16)
    h1 = jnp.dot(xb, w1.astype(jnp.bfloat16),
                 preferred_element_type=jnp.float32) + b1
    o1 = jnp.maximum(h1, 0.0)
    h2 = jnp.dot(o1.astype(jnp.bfloat16), w2.astype(jnp.bfloat16),
                 preferred_element_type=jnp.float32) + b2
    o2 = jax.nn.sigmoid(h2)
    ref_bf16 = jnp.dot(o2.astype(jnp.bfloat16), w3.astype(jnp.bfloat16),
                       preferred_element_type=jnp.float32) + b3
    assert jnp.allclose(out, ref_bf16, atol=2e-3, rtol=2e-3)

    # Loose check against the pure-f32 PyTorch semantics (bf16 operand rounding only).
    h1f = jnp.maximum(ipt @ w1 + b1, 0.0)
    h2f = jax.nn.sigmoid(h1f @ w2 + b2)
    ref_f32 = h2f @ w3 + b3
    assert jnp.allclose(out, ref_f32, atol=5e-2, rtol=5e-2)

    print("KERNEL_OK")
</pallas_src>

<mosaic_0001>
module attributes {stable_mosaic.version = 11 : i64} {
  func.func @mynet_kernel(%arg0: i32, %arg1: memref<16x32xbf16, #tpu.memory_space<vmem>>, %arg2: memref<32x12xbf16, #tpu.memory_space<vmem>>, %arg3: memref<1x12xf32, #tpu.memory_space<vmem>>, %arg4: memref<12x8xbf16, #tpu.memory_space<vmem>>, %arg5: memref<1x8xf32, #tpu.memory_space<vmem>>, %arg6: memref<8x128xbf16, #tpu.memory_space<vmem>>, %arg7: memref<1x128xf32, #tpu.memory_space<vmem>>, %arg8: memref<16x128xf32, #tpu.memory_space<vmem>>) attributes {dimension_semantics = [#tpu.dimension_semantics<parallel>], iteration_bounds = array<i64: 3>, scalar_prefetch = 0 : i64, scratch_operands = 0 : i64, tpu.core_type = #tpu.core_type<tc>, window_params = [{transform_indices = @transform_0, window_bounds = array<i64: 16, 32>}, {pipeline_mode = #tpu.pipeline_mode<synchronous>, transform_indices = @transform_1, window_bounds = array<i64: 32, 12>}, {pipeline_mode = #tpu.pipeline_mode<synchronous>, transform_indices = @transform_2, window_bounds = array<i64: 1, 12>}, {pipeline_mode = #tpu.pipeline_mode<synchronous>, transform_indices = @transform_3, window_bounds = array<i64: 12, 8>}, {pipeline_mode = #tpu.pipeline_mode<synchronous>, transform_indices = @transform_4, window_bounds = array<i64: 1, 8>}, {pipeline_mode = #tpu.pipeline_mode<synchronous>, transform_indices = @transform_5, window_bounds = array<i64: 8, 128>}, {pipeline_mode = #tpu.pipeline_mode<synchronous>, transform_indices = @transform_6, window_bounds = array<i64: 1, 128>}, {transform_indices = @transform_7, window_bounds = array<i64: 16, 128>}]} {
    %c0 = arith.constant 0 : index
    %c0_0 = arith.constant 0 : index
    %0 = vector.load %arg1[%c0, %c0_0] : memref<16x32xbf16, #tpu.memory_space<vmem>>, vector<16x32xbf16>
    %c0_1 = arith.constant 0 : index
    %c0_2 = arith.constant 0 : index
    %1 = vector.load %arg2[%c0_1, %c0_2] : memref<32x12xbf16, #tpu.memory_space<vmem>>, vector<32x12xbf16>
    %cst = arith.constant dense<0.000000e+00> : vector<16x12xf32>
    %2 = tpu.matmul %0, %1, %cst {dimension_numbers = #tpu.dot_dimension_numbers<[1], [0], [0], [1], [0, 0, 1, 1], [], []>} : vector<16x32xbf16>, vector<32x12xbf16>, vector<16x12xf32> -> vector<16x12xf32>
    %c0_3 = arith.constant 0 : index
    %c0_4 = arith.constant 0 : index
    %3 = vector.load %arg3[%c0_3, %c0_4] : memref<1x12xf32, #tpu.memory_space<vmem>>, vector<1x12xf32>
    %4 = vector.broadcast %3 : vector<1x12xf32> to vector<16x12xf32>
    %5 = arith.addf %2, %4 : vector<16x12xf32>
    %cst_5 = arith.constant 0.000000e+00 : f32
    %6 = vector.broadcast %cst_5 : f32 to vector<16x12xf32>
    %7 = arith.maximumf %5, %6 : vector<16x12xf32>
    %8 = arith.truncf %7 : vector<16x12xf32> to vector<16x12xbf16>
    %c0_6 = arith.constant 0 : index
    %c0_7 = arith.constant 0 : index
    %9 = vector.load %arg4[%c0_6, %c0_7] : memref<12x8xbf16, #tpu.memory_space<vmem>>, vector<12x8xbf16>
    %cst_8 = arith.constant dense<0.000000e+00> : vector<16x8xf32>
    %10 = tpu.matmul %8, %9, %cst_8 {dimension_numbers = #tpu.dot_dimension_numbers<[1], [0], [0], [1], [0, 0, 1, 1], [], []>} : vector<16x12xbf16>, vector<12x8xbf16>, vector<16x8xf32> -> vector<16x8xf32>
    %c0_9 = arith.constant 0 : index
    %c0_10 = arith.constant 0 : index
    %11 = vector.load %arg5[%c0_9, %c0_10] : memref<1x8xf32, #tpu.memory_space<vmem>>, vector<1x8xf32>
    %12 = vector.broadcast %11 : vector<1x8xf32> to vector<16x8xf32>
    %13 = arith.addf %10, %12 : vector<16x8xf32>
    %14 = arith.negf %13 : vector<16x8xf32>
    %15 = math.exp %14 : vector<16x8xf32>
    %cst_11 = arith.constant 1.000000e+00 : f32
    %16 = vector.broadcast %cst_11 : f32 to vector<16x8xf32>
    %17 = arith.addf %16, %15 : vector<16x8xf32>
    %18 = arith.divf %16, %17 : vector<16x8xf32>
    %19 = arith.truncf %18 : vector<16x8xf32> to vector<16x8xbf16>
    %c0_12 = arith.constant 0 : index
    %c0_13 = arith.constant 0 : index
    %20 = vector.load %arg6[%c0_12, %c0_13] : memref<8x128xbf16, #tpu.memory_space<vmem>>, vector<8x128xbf16>
    %cst_14 = arith.constant dense<0.000000e+00> : vector<16x128xf32>
    %21 = tpu.matmul %19, %20, %cst_14 {dimension_numbers = #tpu.dot_dimension_numbers<[1], [0], [0], [1], [0, 0, 1, 1], [], []>} : vector<16x8xbf16>, vector<8x128xbf16>, vector<16x128xf32> -> vector<16x128xf32>
    %c0_15 = arith.constant 0 : index
    %c0_16 = arith.constant 0 : index
    %22 = vector.load %arg7[%c0_15, %c0_16] : memref<1x128xf32, #tpu.memory_space<vmem>>, vector<1x128xf32>
    %23 = vector.broadcast %22 : vector<1x128xf32> to vector<16x128xf32>
    %24 = arith.addf %21, %23 : vector<16x128xf32>
    %c0_17 = arith.constant 0 : index
    %c0_18 = arith.constant 0 : index
    %25 = vector.load %arg8[%c0_17, %c0_18] : memref<16x128xf32, #tpu.memory_space<vmem>>, vector<16x128xf32>
    tpu.vector_store %arg8[%c0_17, %c0_18], %24 {strides = array<i32>} : memref<16x128xf32, #tpu.memory_space<vmem>>, vector<16x128xf32>,
    return
  }
  func.func @transform_0(%arg0: i32) -> (i32, i32) {
    %c0_i32 = arith.constant 0 : i32
    %c0_i32_0 = arith.constant 0 : i32
    return %arg0, %c0_i32 : i32, i32
  }
  func.func @transform_1(%arg0: i32) -> (i32, i32) {
    %c0_i32 = arith.constant 0 : i32
    %c0_i32_0 = arith.constant 0 : i32
    %c0_i32_1 = arith.constant 0 : i32
    return %c0_i32, %c0_i32_0 : i32, i32
  }
  func.func @transform_2(%arg0: i32) -> (i32, i32) {
    %c0_i32 = arith.constant 0 : i32
    %c0_i32_0 = arith.constant 0 : i32
    %c0_i32_1 = arith.constant 0 : i32
    return %c0_i32, %c0_i32_0 : i32, i32
  }
  func.func @transform_3(%arg0: i32) -> (i32, i32) {
    %c0_i32 = arith.constant 0 : i32
    %c0_i32_0 = arith.constant 0 : i32
    %c0_i32_1 = arith.constant 0 : i32
    return %c0_i32, %c0_i32_0 : i32, i32
  }
  func.func @transform_4(%arg0: i32) -> (i32, i32) {
    %c0_i32 = arith.constant 0 : i32
    %c0_i32_0 = arith.constant 0 : i32
    %c0_i32_1 = arith.constant 0 : i32
    return %c0_i32, %c0_i32_0 : i32, i32
  }
  func.func @transform_5(%arg0: i32) -> (i32, i32) {
    %c0_i32 = arith.constant 0 : i32
    %c0_i32_0 = arith.constant 0 : i32
    %c0_i32_1 = arith.constant 0 : i32
    return %c0_i32, %c0_i32_0 : i32, i32
  }
  func.func @transform_6(%arg0: i32) -> (i32, i32) {
    %c0_i32 = arith.constant 0 : i32
    %c0_i32_0 = arith.constant 0 : i32
    %c0_i32_1 = arith.constant 0 : i32
    return %c0_i32, %c0_i32_0 : i32, i32
  }
  func.func @transform_7(%arg0: i32) -> (i32, i32) {
    %c0_i32 = arith.constant 0 : i32
    %c0_i32_0 = arith.constant 0 : i32
    return %arg0, %c0_i32 : i32, i32
  }
}

</mosaic_0001>

<bundles_post_ra>
// kernel: mynet_forward.1
= control target key start
LH: loop header
LB: loop body
LE: loop exit
PB: predicated region body
PF: predicated region fallthrough
CT: control target
= control target key end

     0   :  { %s591_s24 = smov 0   ;;  %s636_s0 = inlined_call_operand.vmem [shape: bf16[48,32], index: 0, kind: input, shape index: {}]   ;;  %s637_s1 = inlined_call_operand.vmem [shape: bf16[32,12], index: 1, kind: input, shape index: {}]   ;;  %s638_s2 = inlined_call_operand.vmem [shape: f32[1,12], index: 2, kind: input, shape index: {}]   ;;  %s639_s3 = inlined_call_operand.vmem [shape: bf16[12,8], index: 3, kind: input, shape index: {}]   ;;  %s640_s4 = inlined_call_operand.vmem [shape: f32[1,8], index: 4, kind: input, shape index: {}]   ;;  %s641_s5 = inlined_call_operand.vmem [shape: bf16[8,128], index: 5, kind: input, shape index: {}]   ;;  %s642_s6 = inlined_call_operand.vmem [shape: f32[1,128], index: 6, kind: input, shape index: {}]   ;;  %s643_s7 = inlined_call_operand.vmem [shape: f32[48,128], index: 7, kind: output, shape index: {}]  }
   0x1 LB: > { %s488_s25 = sadd.s32 4294967295, %s549_s24   ;;  %p492_p0 = scmp.ge.s32.totalorder %s549_s24, 1  ;;  %s549_s24 = sphi %s591_s24, %s17_s24  }
   0x2   : > { %p238_p1 = scmp.lt.s32.totalorder %s549_s24, 4 }
   0x4   : > { %p239_p2 = pnand %p492_p0, %p238_p1 }
   0x5   : > { %s493_s28 = sshll.u32 (!%p239_p2), %s488_s25, 1 }
   0x6   : > { %242 = sbr.rel (%p239_p2) target bundleno = 468 (0x1d4), region = 48  ;;  %p271_p3 = scmp.lt.s32.totalorder (!%p239_p2), %s493_s28, 5 }
   0xb   : > { %v522_v0 = vld [vmem:[%s637_s1 + $0x8] sm:$0xff]  ;;  %v521_v1 = vld [vmem:[%s637_s1] sm:$0xff]  ;;  %s645_s28 = smov (!%p271_p3, %s493_s28), 5  ;;  %vm310_vm0 = vcmask 261120   ;;  %vm346_vm1 = vcmask 1045504   ;;  %vm342_vm2 = vcmask 97280  }
   0xc   : > { %320 = vmatpush.bf16.msra.mxu0 %v522_v0  ;;  %s494_s8 = sshll.u32 %s645_s28, 2  ;;  %v512_v3 = vld [vmem:[%s639_s3] sm:$0xf]  ;;  %v523_v4 = vld [vmem:[%s639_s3] sm:$0x30]  ;;  %vm412_vm3 = vcmask 1043456  }
   0xd   : > { %s274_s11 = scalar_lea.vmem %s636_s0, %s494_s8  ;;  %v513_v5 = vor.u32 %v523_v4, %v512_v3  ;;  %v532_v8 = vld [vmem:[%s638_s2] ss:$0 sm:$0xff]  ;;  %vm408_vm12 = vcmask 64512   ;;  %s496_s22 = sshll.u32 %s645_s28, 3 }
   0xe   : > { %v520_v2 = vld [vmem:[%s274_s11] sm:$0xff]  ;;  %s280_s29 = scalar_lea.vmem %s643_s7, %s496_s22 }
   0xf   : > { %v348_v6 = vsel %vm346_vm1, %v513_v5, 0  ;;  %v533_v15 = vld [vmem:[%s640_s4] ss:$0 sm:$0xff] }
  0x10   : > { %321 = vmatpush.bf16.msra.mxu0 %v521_v1  ;;  %357 = vmatpush.bf16.msra.mxu1 %v348_v6  ;;  %v403_v16 = vld [vmem:[%s641_s5] sm:$0xf] }
  0x11   : > { %v414_v17 = vsel %vm412_vm3, %v403_v16, 0  ;;  %v534_v49 = vld [vmem:[%s642_s6] ss:$0 sm:$0xff] }
  0x12   : > { %423 = vmatpush.bf16.msra.mxu2 %v414_v17 }
  0x13   : > { %509 = vmatmul.msk.bf16.vlgmr.msra.gmra.mxu0 %vm310_vm0, %v520_v2 }
  0x90   : > { %v323_v7 = vpop.f32.mrf.mxu0 }
  0x91   : > { %v324_v9 = vadd.f32 %v532_v8, %v323_v7 }
  0x93   : > { %v328_v12 = vmax.f32 %v324_v9, 0.0 }
  0x98   : > { %v325_v10 = vpop.f32.mrf.mxu0 }
  0x99   : > { %v326_v11 = vadd.f32 %v532_v8, %v325_v10 }
  0x9b   : > { %v329_v13 = vmax.f32 %v326_v11, 0.0 }
  0x9d   : > { %v330_v14 = vpack.c.bf16 %v329_v13, %v328_v12 }
  0x9f   : > { %514 = vmatmul.msk.bf16.vlgmr.msra.gmra.mxu1 %vm342_vm2, %v330_v14 }
 0x11c   : > { %v359_v18 = vpop.f32.mrf.mxu1 }
 0x11d   : > { %v360_v19 = vadd.f32 %v533_v15, %v359_v18 }
 0x11f   : > { %v515_v20 = vmul.f32 -1.442695, %v360_v19 }
 0x121   : > { %535 = vpow2.f32 %v515_v20 }
 0x124   : > { %v361_v21 = vpop.f32.mrf.mxu1 }
 0x125   : > { %v362_v22 = vadd.f32 %v533_v15, %v361_v21 }
 0x127   : > { %v536_v23 = vpop.eup %535  ;;  %v516_v24 = vmul.f32 -1.442695, %v362_v22 }
 0x128   : > { %v370_v25 = vadd.f32 1.0, %v536_v23 }
 0x129   : > { %537 = vpow2.f32 %v516_v24 }
 0x12a   : > { %539 = vrcp.f32 %v370_v25  ;;  %vm377_vm5 = vweird.f32 %v370_v25  ;;  %v383_v36 = vand.u32 2147483648, %v370_v25  ;;  %v381_v38 = vand.u32 2147483647, %v370_v25 }
 0x12c   : > { %v384_v43 = vor.u32 1.1754944e-38, %v383_v36  ;;  %vm382_vm10 = vcmp.eq.f32.partialorder %v381_v38, 8.507059e+37 }
 0x12f   : > { %v538_v26 = vpop.eup %537 }
 0x130   : > { %v540_v27 = vpop.eup %539  ;;  %v371_v28 = vadd.f32 1.0, %v538_v26 }
 0x131   : > { %v373_v29 = vmul.f32 %v540_v27, %v370_v25  ;;  %vm378_vm4 = vweird.f32 %v540_v27 }
 0x132   : > { %541 = vrcp.f32 %v371_v28  ;;  %v398_v37 = vand.u32 2147483648, %v371_v28  ;;  %v396_v40 = vand.u32 2147483647, %v371_v28  ;;  %vm379_vm7 = vmor %vm377_vm5, %vm378_vm4  ;;  %vm392_vm8 = vweird.f32 %v371_v28 }
 0x133   : > { %v374_v30 = vsub.f32 1.0, %v373_v29 }
 0x134   : > { %v399_v44 = vor.u32 1.1754944e-38, %v398_v37  ;;  %vm397_vm11 = vcmp.eq.f32.partialorder %v396_v40, 8.507059e+37 }
 0x135   : > { %v375_v31 = vmul.f32 %v540_v27, %v374_v30 }
 0x137   : > { %v376_v34 = vadd.f32 %v540_v27, %v375_v31 }
 0x138   : > { %v542_v32 = vpop.eup %541 }
 0x139   : > { %v388_v33 = vmul.f32 %v542_v32, %v371_v28  ;;  %vm393_vm6 = vweird.f32 %v542_v32  ;;  %v380_v41 = vsel %vm379_vm7, %v540_v27, %v376_v34 }
 0x13a   : > { %vm394_vm9 = vmor %vm392_vm8, %vm393_vm6  ;;  %v385_v46 = vsel %vm382_vm10, %v384_v43, %v380_v41 }
 0x13b   : > { %v389_v35 = vsub.f32 1.0, %v388_v33 }
 0x13d   : > { %v390_v39 = vmul.f32 %v542_v32, %v389_v35 }
 0x13f   : > { %v391_v42 = vadd.f32 %v542_v32, %v390_v39 }
 0x141   : > { %v395_v45 = vsel %vm394_vm9, %v542_v32, %v391_v42 }
 0x142   : > { %v400_v47 = vsel %vm397_vm11, %v399_v44, %v395_v45 }
 0x143   : > { %v402_v48 = vpack.c.bf16 %v400_v47, %v385_v46 }
 0x145   : > { %517 = vmatmul.msk.bf16.vlgmr.msra.gmra.mxu2 %vm408_vm12, %v402_v48 }
 0x1c8   : > { %v425_v50 = vpop.f32.mrf.mxu2 }
 0x1c9   : > { %v426_v51 = vadd.f32 %v534_v49, %v425_v50 }
 0x1cb   : > { %430 = vst [vmem:[%s280_s29] sm:$0xff] %v426_v51 }
 0x1d0   : > { %v427_v52 = vpop.f32.mrf.mxu2 }
 0x1d1   : > { %v428_v53 = vadd.f32 %v534_v49, %v427_v52 }
 0x1d3   : > { %431 = vst [vmem:[%s280_s29 + $0x8] sm:$0xff] %v428_v53 }
 0x1d4 PF: > { %s17_s24 = sadd.s32 1, %s549_s24  }
 0x1d5   : > { %p14_p4 = scmp.ge.s32.totalorder %s17_s24, 5  }
 0x1d7   :  { %16 = sbr.rel (!%p14_p4) target bundleno = 1 (0x1), region = 78 }

</bundles_post_ra>
